<compile_context>
chip_gen: v7x
topology: tpu7x:2x2x1
jax: 0.10.0
libtpu: 0.0.40
codegen_flags: <defaults>
</compile_context>

<pallas_src>
import functools

import jax
import jax.numpy as jnp
from jax.experimental import pallas as pl
from jax.experimental.pallas import tpu as pltpu

_LANE = 128


def _round_up(n, m):
    return (n + m - 1) // m * m


def _ann_kernel(x_ref, w1_ref, b1_ref, w2_ref, b2_ref, w3_ref, b3_ref, out_ref,
                *, num_classes):
    """Fused MLP forward for one batch tile: (Linear+ReLU) x2, Linear, Softmax.

    x arrives as f32 and is cast to bf16 here (MXU operand); weights are
    pre-cast bf16; accumulation and all elementwise math stay f32 (v5e has no
    bf16 VPU/EUP path).  The last bias carries -1e30 in its padded class
    lanes, so those lanes vanish (exp -> 0) in the softmax; only the real
    `num_classes` lanes are stored back to HBM.
    """
    x = x_ref[...].astype(jnp.bfloat16)

    # Hidden layer 1: Linear + ReLU (f32 accumulation on the MXU).
    h1 = jnp.dot(x, w1_ref[...], preferred_element_type=jnp.float32) + b1_ref[...]
    h1 = jnp.maximum(h1, 0.0)

    # Hidden layer 2: Linear + ReLU.
    h2 = jnp.dot(h1.astype(jnp.bfloat16), w2_ref[...],
                 preferred_element_type=jnp.float32) + b2_ref[...]
    h2 = jnp.maximum(h2, 0.0)

    # Output layer: Linear.  Padded class lanes get bias -1e30 (baked-in mask).
    logits = jnp.dot(h2.astype(jnp.bfloat16), w3_ref[...],
                     preferred_element_type=jnp.float32) + b3_ref[...]

    # Numerically stable softmax along the lane axis.  Reductions run on the
    # lane-dense padded width; masked lanes contribute exp(-huge) == 0.
    m = jnp.max(logits, axis=-1, keepdims=True)
    e = jnp.exp(logits - m)
    denom = jnp.sum(e, axis=-1, keepdims=True)
    probs = e / denom  # exact divide: each row sums to 1 at f32 precision

    # Narrow store: only the real class columns go back to HBM.
    out_ref[...] = probs[:, :num_classes].astype(out_ref.dtype)


def _prepare_params(params):
    """Pad/cast parameters once (hoisted out of the per-call path).

    wK is [in, out] (already transposed from PyTorch's [out, in]); bK is
    [out] or [1, out].  Hidden/output feature dims are zero-padded to
    multiples of 128 (lane-dense matmuls); the input feature dim stays
    unpadded (the x block's last dim equals the full array dim, which is
    legal).  The final bias's padded lanes are filled with -1e30 so the
    softmax mask is baked in for free.
    """
    w1, b1 = params["w1"], params["b1"]
    w2, b2 = params["w2"], params["b2"]
    w3, b3 = params["w3"], params["b3"]
    d0 = w1.shape[0]
    p1 = _round_up(w1.shape[1], _LANE)
    p2 = _round_up(w2.shape[1], _LANE)
    p3 = _round_up(w3.shape[1], _LANE)
    num_classes = w3.shape[1]

    def pad_w(w, pi, po):
        return jnp.pad(w, ((0, pi - w.shape[0]), (0, po - w.shape[1]))
                       ).astype(jnp.bfloat16)

    def pad_b(b, po, fill=0.0):
        b = jnp.reshape(b, (1, -1)).astype(jnp.float32)
        return jnp.pad(b, ((0, 0), (0, po - b.shape[1])), constant_values=fill)

    prepared = (
        pad_w(w1, d0, p1), pad_b(b1, p1),
        pad_w(w2, p1, p2), pad_b(b2, p2),
        pad_w(w3, p2, p3), pad_b(b3, p3, fill=-1e30),
    )
    return prepared, num_classes


def _ann_forward_impl(x, prepared, num_classes, batch_tile):
    w1p, b1p, w2p, b2p, w3p, b3p = prepared
    B, D0 = x.shape
    P1, P2, P3 = w1p.shape[1], w2p.shape[1], w3p.shape[1]

    # Batch tile: multiple of 8 (f32 sublane).  Default: a single grid step up
    # to 1024 rows — v5e/v6e have one TensorCore, so splitting a small batch
    # only adds fixed per-step overhead.  For large B on v7x, pass batch_tile
    # so the "parallel" batch axis can shard across its two TensorCores.
    if batch_tile is None:
        batch_tile = min(1024, _round_up(B, 8))
    tb = max(8, _round_up(batch_tile, 8))
    Bp = _round_up(B, tb)
    xp = jnp.pad(x, ((0, Bp - B), (0, 0))) if Bp != B else x
    grid = (Bp // tb,)

    # Weights/biases are tiny: load them whole, same block every grid step.
    full = lambda shape: pl.BlockSpec(shape, lambda i: (0,) * len(shape))
    kernel = functools.partial(_ann_kernel, num_classes=num_classes)

    out = pl.pallas_call(
        kernel,
        out_shape=jax.ShapeDtypeStruct((Bp, num_classes), jnp.float32),
        grid_spec=pltpu.PrefetchScalarGridSpec(
            num_scalar_prefetch=0,
            grid=grid,
            in_specs=[
                pl.BlockSpec((tb, D0), lambda i: (i, 0)),   # x tile (f32, unpadded)
                full((D0, P1)), full((1, P1)),              # layer 1
                full((P1, P2)), full((1, P2)),              # layer 2
                full((P2, P3)), full((1, P3)),              # output layer
            ],
            out_specs=pl.BlockSpec((tb, num_classes), lambda i: (i, 0)),
        ),
        compiler_params=pltpu.CompilerParams(
            dimension_semantics=("parallel",)),
    )(xp, w1p, b1p, w2p, b2p, w3p, b3p)

    return out[:B] if Bp != B else out


def make_ann_forward(params, *, batch_tile=None):
    """Prepare (pad/cast) params once; return a jitted forward(x) -> probs."""
    prepared, num_classes = _prepare_params(params)

    @jax.jit
    def forward(x):
        return _ann_forward_impl(x, prepared, num_classes, batch_tile)

    return forward


def init_params(key, dims):
    """Deterministic init mimicking nn.Linear default (uniform +/- 1/sqrt(fan_in)).

    Returns weights already transposed to [in, out] and biases as [1, out].
    """
    params = {}
    layer_idx = 0
    for i in range(len(dims) - 1):
        fan_in, fan_out = dims[i], dims[i + 1]
        key, kw, kb = jax.random.split(key, 3)
        bound = 1.0 / jnp.sqrt(jnp.float32(fan_in))
        w = jax.random.uniform(kw, (fan_in, fan_out), jnp.float32, -bound, bound)
        b = jax.random.uniform(kb, (1, fan_out), jnp.float32, -bound, bound)
        layer_idx += 1
        params[f"w{layer_idx}"] = w
        params[f"b{layer_idx}"] = b
    return params


def ann_reference_f32(x, params):
    """Pure-JAX f32 reference (matches the PyTorch forward exactly)."""
    h = jnp.maximum(x @ params["w1"] + params["b1"], 0.0)
    h = jnp.maximum(h @ params["w2"] + params["b2"], 0.0)
    logits = h @ params["w3"] + params["b3"]
    return jax.nn.softmax(logits, axis=-1)


def ann_reference_bf16(x, params):
    """Reference with the same bf16-operand / f32-accumulate matmuls as the kernel."""
    bf = lambda a: a.astype(jnp.bfloat16)
    h = jnp.maximum(
        jnp.dot(bf(x), bf(params["w1"]), preferred_element_type=jnp.float32)
        + params["b1"], 0.0)
    h = jnp.maximum(
        jnp.dot(bf(h), bf(params["w2"]), preferred_element_type=jnp.float32)
        + params["b2"], 0.0)
    logits = (jnp.dot(bf(h), bf(params["w3"]), preferred_element_type=jnp.float32)
              + params["b3"])
    return jax.nn.softmax(logits, axis=-1)


# TODO(synk): training machinery (fit/Adam/CrossEntropyLoss/DataLoader/sampler)
# is host-side PyTorch plumbing with no Pallas equivalent; only forward() is
# implemented here.

if __name__ == "__main__":
    # dims = [input, hidden, hidden, classes]  (ANN(dims=[16, 32, 32, 8], lr=...))
    dims = [16, 32, 32, 8]
    batch = 256  # matches ANN.batch_size

    key = jax.random.PRNGKey(0)
    key, kx = jax.random.split(key)
    x = jax.random.normal(kx, (batch, dims[0]), jnp.float32)
    params = init_params(key, dims)

    forward = make_ann_forward(params)
    out = jax.block_until_ready(forward(x))

    assert out.shape == (batch, dims[-1])
    # Exact divide in the kernel -> each softmax row sums to 1 (f32 rounding only).
    assert jnp.allclose(jnp.sum(out, axis=-1), 1.0, atol=1e-4)
    # Match the bf16-matmul reference tightly, and the pure-f32 PyTorch-style
    # reference within bf16 operand precision.
    ref_bf16 = ann_reference_bf16(x, params)
    ref_f32 = ann_reference_f32(x, params)
    assert jnp.allclose(out, ref_bf16, atol=2e-3)
    assert jnp.allclose(out, ref_f32, atol=1e-2)

    print("KERNEL_OK")
</pallas_src>

<mosaic_0001>
module attributes {stable_mosaic.version = 11 : i64} {
  func.func @_ann_kernel(%arg0: i32, %arg1: memref<256x16xf32, #tpu.memory_space<vmem>>, %arg2: memref<16x128xbf16, #tpu.memory_space<vmem>>, %arg3: memref<1x128xf32, #tpu.memory_space<vmem>>, %arg4: memref<128x128xbf16, #tpu.memory_space<vmem>>, %arg5: memref<1x128xf32, #tpu.memory_space<vmem>>, %arg6: memref<128x128xbf16, #tpu.memory_space<vmem>>, %arg7: memref<1x128xf32, #tpu.memory_space<vmem>>, %arg8: memref<256x8xf32, #tpu.memory_space<vmem>>) attributes {dimension_semantics = [#tpu.dimension_semantics<parallel>], iteration_bounds = array<i64: 1>, scalar_prefetch = 0 : i64, scratch_operands = 0 : i64, tpu.core_type = #tpu.core_type<tc>, window_params = [{transform_indices = @transform_0, window_bounds = array<i64: 256, 16>}, {pipeline_mode = #tpu.pipeline_mode<synchronous>, transform_indices = @transform_1, window_bounds = array<i64: 16, 128>}, {pipeline_mode = #tpu.pipeline_mode<synchronous>, transform_indices = @transform_2, window_bounds = array<i64: 1, 128>}, {pipeline_mode = #tpu.pipeline_mode<synchronous>, transform_indices = @transform_3, window_bounds = array<i64: 128, 128>}, {pipeline_mode = #tpu.pipeline_mode<synchronous>, transform_indices = @transform_4, window_bounds = array<i64: 1, 128>}, {pipeline_mode = #tpu.pipeline_mode<synchronous>, transform_indices = @transform_5, window_bounds = array<i64: 128, 128>}, {pipeline_mode = #tpu.pipeline_mode<synchronous>, transform_indices = @transform_6, window_bounds = array<i64: 1, 128>}, {transform_indices = @transform_7, window_bounds = array<i64: 256, 8>}]} {
    %c0 = arith.constant 0 : index
    %c0_0 = arith.constant 0 : index
    %0 = vector.load %arg1[%c0, %c0_0] : memref<256x16xf32, #tpu.memory_space<vmem>>, vector<256x16xf32>
    %1 = arith.truncf %0 : vector<256x16xf32> to vector<256x16xbf16>
    %c0_1 = arith.constant 0 : index
    %c0_2 = arith.constant 0 : index
    %2 = vector.load %arg2[%c0_1, %c0_2] : memref<16x128xbf16, #tpu.memory_space<vmem>>, vector<16x128xbf16>
    %cst = arith.constant dense<0.000000e+00> : vector<256x128xf32>
    %3 = tpu.matmul %1, %2, %cst {dimension_numbers = #tpu.dot_dimension_numbers<[1], [0], [0], [1], [0, 0, 1, 1], [], []>} : vector<256x16xbf16>, vector<16x128xbf16>, vector<256x128xf32> -> vector<256x128xf32>
    %c0_3 = arith.constant 0 : index
    %c0_4 = arith.constant 0 : index
    %4 = vector.load %arg3[%c0_3, %c0_4] : memref<1x128xf32, #tpu.memory_space<vmem>>, vector<1x128xf32>
    %5 = vector.broadcast %4 : vector<1x128xf32> to vector<256x128xf32>
    %6 = arith.addf %3, %5 : vector<256x128xf32>
    %cst_5 = arith.constant 0.000000e+00 : f32
    %7 = vector.broadcast %cst_5 : f32 to vector<256x128xf32>
    %8 = arith.maximumf %6, %7 : vector<256x128xf32>
    %9 = arith.truncf %8 : vector<256x128xf32> to vector<256x128xbf16>
    %c0_6 = arith.constant 0 : index
    %c0_7 = arith.constant 0 : index
    %10 = vector.load %arg4[%c0_6, %c0_7] : memref<128x128xbf16, #tpu.memory_space<vmem>>, vector<128x128xbf16>
    %cst_8 = arith.constant dense<0.000000e+00> : vector<256x128xf32>
    %11 = tpu.matmul %9, %10, %cst_8 {dimension_numbers = #tpu.dot_dimension_numbers<[1], [0], [0], [1], [0, 0, 1, 1], [], []>} : vector<256x128xbf16>, vector<128x128xbf16>, vector<256x128xf32> -> vector<256x128xf32>
    %c0_9 = arith.constant 0 : index
    %c0_10 = arith.constant 0 : index
    %12 = vector.load %arg5[%c0_9, %c0_10] : memref<1x128xf32, #tpu.memory_space<vmem>>, vector<1x128xf32>
    %13 = vector.broadcast %12 : vector<1x128xf32> to vector<256x128xf32>
    %14 = arith.addf %11, %13 : vector<256x128xf32>
    %cst_11 = arith.constant 0.000000e+00 : f32
    %15 = vector.broadcast %cst_11 : f32 to vector<256x128xf32>
    %16 = arith.maximumf %14, %15 : vector<256x128xf32>
    %17 = arith.truncf %16 : vector<256x128xf32> to vector<256x128xbf16>
    %c0_12 = arith.constant 0 : index
    %c0_13 = arith.constant 0 : index
    %18 = vector.load %arg6[%c0_12, %c0_13] : memref<128x128xbf16, #tpu.memory_space<vmem>>, vector<128x128xbf16>
    %cst_14 = arith.constant dense<0.000000e+00> : vector<256x128xf32>
    %19 = tpu.matmul %17, %18, %cst_14 {dimension_numbers = #tpu.dot_dimension_numbers<[1], [0], [0], [1], [0, 0, 1, 1], [], []>} : vector<256x128xbf16>, vector<128x128xbf16>, vector<256x128xf32> -> vector<256x128xf32>
    %c0_15 = arith.constant 0 : index
    %c0_16 = arith.constant 0 : index
    %20 = vector.load %arg7[%c0_15, %c0_16] : memref<1x128xf32, #tpu.memory_space<vmem>>, vector<1x128xf32>
    %21 = vector.broadcast %20 : vector<1x128xf32> to vector<256x128xf32>
    %22 = arith.addf %19, %21 : vector<256x128xf32>
    %cst_17 = arith.constant dense<0xFF800000> : vector<256xf32>
    %23 = vector.multi_reduction <maximumf>, %22, %cst_17 [1] : vector<256x128xf32> to vector<256xf32>
    %24 = vector.shape_cast %23 : vector<256xf32> to vector<256x1xf32>
    %25 = vector.broadcast %24 : vector<256x1xf32> to vector<256x128xf32>
    %26 = arith.subf %22, %25 : vector<256x128xf32>
    %27 = math.exp %26 : vector<256x128xf32>
    %cst_18 = arith.constant dense<0.000000e+00> : vector<256xf32>
    %28 = vector.multi_reduction <add>, %27, %cst_18 [1] : vector<256x128xf32> to vector<256xf32>
    %29 = vector.shape_cast %28 : vector<256xf32> to vector<256x1xf32>
    %30 = vector.broadcast %29 : vector<256x1xf32> to vector<256x128xf32>
    %31 = arith.divf %27, %30 : vector<256x128xf32>
    %32 = vector.extract_strided_slice %31 {offsets = [0, 0], sizes = [256, 8], strides = [1, 1]} : vector<256x128xf32> to vector<256x8xf32>
    %c0_19 = arith.constant 0 : index
    %c0_20 = arith.constant 0 : index
    %33 = vector.load %arg8[%c0_19, %c0_20] : memref<256x8xf32, #tpu.memory_space<vmem>>, vector<256x8xf32>
    tpu.vector_store %arg8[%c0_19, %c0_20], %32 {strides = array<i32>} : memref<256x8xf32, #tpu.memory_space<vmem>>, vector<256x8xf32>,
    return
  }
  func.func @transform_0(%arg0: i32) -> (i32, i32) {
    %c0_i32 = arith.constant 0 : i32
    %c0_i32_0 = arith.constant 0 : i32
    return %arg0, %c0_i32 : i32, i32
  }
  func.func @transform_1(%arg0: i32) -> (i32, i32) {
    %c0_i32 = arith.constant 0 : i32
    %c0_i32_0 = arith.constant 0 : i32
    %c0_i32_1 = arith.constant 0 : i32
    return %c0_i32, %c0_i32_0 : i32, i32
  }
  func.func @transform_2(%arg0: i32) -> (i32, i32) {
    %c0_i32 = arith.constant 0 : i32
    %c0_i32_0 = arith.constant 0 : i32
    %c0_i32_1 = arith.constant 0 : i32
    return %c0_i32, %c0_i32_0 : i32, i32
  }
  func.func @transform_3(%arg0: i32) -> (i32, i32) {
    %c0_i32 = arith.constant 0 : i32
    %c0_i32_0 = arith.constant 0 : i32
    %c0_i32_1 = arith.constant 0 : i32
    return %c0_i32, %c0_i32_0 : i32, i32
  }
  func.func @transform_4(%arg0: i32) -> (i32, i32) {
    %c0_i32 = arith.constant 0 : i32
    %c0_i32_0 = arith.constant 0 : i32
    %c0_i32_1 = arith.constant 0 : i32
    return %c0_i32, %c0_i32_0 : i32, i32
  }
  func.func @transform_5(%arg0: i32) -> (i32, i32) {
    %c0_i32 = arith.constant 0 : i32
    %c0_i32_0 = arith.constant 0 : i32
    %c0_i32_1 = arith.constant 0 : i32
    return %c0_i32, %c0_i32_0 : i32, i32
  }
  func.func @transform_6(%arg0: i32) -> (i32, i32) {
    %c0_i32 = arith.constant 0 : i32
    %c0_i32_0 = arith.constant 0 : i32
    %c0_i32_1 = arith.constant 0 : i32
    return %c0_i32, %c0_i32_0 : i32, i32
  }
  func.func @transform_7(%arg0: i32) -> (i32, i32) {
    %c0_i32 = arith.constant 0 : i32
    %c0_i32_0 = arith.constant 0 : i32
    return %arg0, %c0_i32 : i32, i32
  }
}

</mosaic_0001>

<bundles_post_ra>
// kernel: forward.1
= control target key start
LH: loop header
LB: loop body
LE: loop exit
PB: predicated region body
PF: predicated region fallthrough
CT: control target
= control target key end

     0   :  { %vm90_vm0 = vcmask 130048   ;;  %vm1148_vm1 = vcmask 64512   ;;  %s2267_s1 = inlined_call_operand.vmem [shape: bf16[16,128], index: 1, kind: input, shape index: {}]   ;;  %s2268_s0 = inlined_call_operand.vmem [shape: f32[256,16], index: 0, kind: input, shape index: {}]   ;;  %s2269_s3 = inlined_call_operand.vmem [shape: bf16[128,128], index: 3, kind: input, shape index: {}]   ;;  %s2270_s5 = inlined_call_operand.vmem [shape: bf16[128,128], index: 5, kind: input, shape index: {}]   ;;  %s2271_s2 = inlined_call_operand.vmem [shape: f32[1,128], index: 2, kind: input, shape index: {}]   ;;  %s2272_s4 = inlined_call_operand.vmem [shape: f32[1,128], index: 4, kind: input, shape index: {}]   ;;  %s2273_s6 = inlined_call_operand.vmem [shape: f32[1,128], index: 6, kind: input, shape index: {}]   ;;  %s2274_s7 = inlined_call_operand.vmem [shape: f32[256,8], index: 7, kind: output, shape index: {}]  }
   0x1   :  { %v1418_v0 = vld [vmem:[%s2267_s1] sm:$0xff]   ;;  %v28_v2 = vld [vmem:[%s2268_s0 + $0x8] sm:$0xff]  ;;  %v29_v3 = vld [vmem:[%s2268_s0 + $0x10] sm:$0xff] }
   0x2   :  { %v27_v1 = vld [vmem:[%s2268_s0] sm:$0xff]  ;;  %1286 = vmatprep.subr.bf16.mxu0 %v1418_v0  ;;  %v30_v5 = vld [vmem:[%s2268_s0 + $0x18] sm:$0xff]  ;;  %v32_v7 = vld [vmem:[%s2268_s0 + $0x28] sm:$0xff]  ;;  %1416 = vmatprep.subr.bf16.mxu1 %v1418_v0 }
   0x3   :  { %v59_v4 = vpack.c.bf16 %v28_v2, %v27_v1  ;;  %v31_v6 = vld [vmem:[%s2268_s0 + $0x20] sm:$0xff]  ;;  %1287 = vmatpush3.bf16.msra.mxu0 %v1418_v0  ;;  %v60_v8 = vpack.c.bf16 %v30_v5, %v29_v3  ;;  %1417 = vmatpush3.bf16.msra.mxu1 %v1418_v0  ;;  %v33_v10 = vld [vmem:[%s2268_s0 + $0x30] sm:$0xff]  ;;  %v34_v11 = vld [vmem:[%s2268_s0 + $0x38] sm:$0xff] }
   0x4   :  { %v61_v9 = vpack.c.bf16 %v32_v7, %v31_v6  ;;  %v43_v12 = vld [vmem:[%s2268_s0 + $0x80] sm:$0xff]  ;;  %v44_v13 = vld [vmem:[%s2268_s0 + $0x88] sm:$0xff]  ;;  %v45_v15 = vld [vmem:[%s2268_s0 + $0x90] sm:$0xff]  ;;  %v62_v23 = vpack.c.bf16 %v34_v11, %v33_v10 }
   0x5   :  { %1288 = vmatprep.mubr.msk.bf16.mxu0 %vm90_vm0, %v59_v4  ;;  %v67_v14 = vpack.c.bf16 %v44_v13, %v43_v12  ;;  %v46_v16 = vld [vmem:[%s2268_s0 + $0x98] sm:$0xff]  ;;  %v47_v17 = vld [vmem:[%s2268_s0 + $0xa0] sm:$0xff]  ;;  %v36_v19 = vld [vmem:[%s2268_s0 + $0x48] sm:$0xff] }
   0x6   :  { %1289 = vmatmul.mubr.msk.bf16.vlgmr.msra.gmra.mrb[0].mxu0 %vm90_vm0, %v60_v8  ;;  %v35_v18 = vld [vmem:[%s2268_s0 + $0x40] sm:$0xff]  ;;  %v68_v20 = vpack.c.bf16 %v46_v16, %v45_v15  ;;  %v48_v21 = vld [vmem:[%s2268_s0 + $0xa8] sm:$0xff]  ;;  %v49_v24 = vld [vmem:[%s2268_s0 + $0xb0] sm:$0xff] }
   0x7   :  { %1292 = vmatprep.mubr.msk.bf16.mxu0 %vm90_vm0, %v61_v9  ;;  %1304 = vmatprep.mubr.msk.bf16.mxu1 %vm90_vm0, %v67_v14  ;;  %v69_v22 = vpack.c.bf16 %v48_v21, %v47_v17  ;;  %v50_v25 = vld [vmem:[%s2268_s0 + $0xb8] sm:$0xff]  ;;  %v63_v26 = vpack.c.bf16 %v36_v19, %v35_v18  ;;  %v51_v27 = vld [vmem:[%s2268_s0 + $0xc0] sm:$0xff]  ;;  %v52_v28 = vld [vmem:[%s2268_s0 + $0xc8] sm:$0xff] }
   0x8   :  { %1305 = vmatmul.mubr.msk.bf16.vlgmr.msra.gmra.mrb[0].mxu1 %vm90_vm0, %v68_v20  ;;  %v1419_v29 = vld [vmem:[%s2269_s3] sm:$0xff]   ;;  %v37_v30 = vld [vmem:[%s2268_s0 + $0x50] sm:$0xff]  ;;  %v38_v31 = vld [vmem:[%s2268_s0 + $0x58] sm:$0xff]  ;;  %v70_v34 = vpack.c.bf16 %v50_v25, %v49_v24  ;;  %v71_v36 = vpack.c.bf16 %v52_v28, %v51_v27 }
   0x9   :  { %1308 = vmatprep.mubr.msk.bf16.mxu1 %vm90_vm0, %v69_v22  ;;  %v1420_v32 = vld [vmem:[%s2269_s3 + $0x8] sm:$0xff]   ;;  %v39_v33 = vld [vmem:[%s2268_s0 + $0x60] sm:$0xff]  ;;  %1320 = vmatprep.subr.bf16.mxu1 %v1419_v29  ;;  %v1421_v37 = vld [vmem:[%s2269_s3 + $0x10] sm:$0xff]   ;;  %v64_v38 = vpack.c.bf16 %v38_v31, %v37_v30 }
   0xa   :  { %v40_v35 = vld [vmem:[%s2268_s0 + $0x68] sm:$0xff]  ;;  %1321 = vmatpush3.bf16.msra.mxu1 %v1419_v29  ;;  %v53_v40 = vld [vmem:[%s2268_s0 + $0xd0] sm:$0xff]  ;;  %v54_v41 = vld [vmem:[%s2268_s0 + $0xd8] sm:$0xff] }
   0xb   :  { %1322 = vmatprep.subr.bf16.mxu1 %v1420_v32  ;;  %v65_v39 = vpack.c.bf16 %v40_v35, %v39_v33  ;;  %v55_v42 = vld [vmem:[%s2268_s0 + $0xe0] sm:$0xff]  ;;  %v56_v43 = vld [vmem:[%s2268_s0 + $0xe8] sm:$0xff]  ;;  %v1422_v44 = vld [vmem:[%s2269_s3 + $0x18] sm:$0xff]   ;;  %v72_v45 = vpack.c.bf16 %v54_v41, %v53_v40 }
   0xc   :  { %v41_v46 = vld [vmem:[%s2268_s0 + $0x70] sm:$0xff]  ;;  %v42_v47 = vld [vmem:[%s2268_s0 + $0x78] sm:$0xff]  ;;  %v73_v48 = vpack.c.bf16 %v56_v43, %v55_v42  ;;  %v1423_v49 = vld [vmem:[%s2269_s3 + $0x20] sm:$0xff]  }
   0xd   :  { %v66_v50 = vpack.c.bf16 %v42_v47, %v41_v46  ;;  %v57_v51 = vld [vmem:[%s2268_s0 + $0xf0] sm:$0xff]  ;;  %v58_v52 = vld [vmem:[%s2268_s0 + $0xf8] sm:$0xff]  ;;  %v1424_v53 = vld [vmem:[%s2269_s3 + $0x28] sm:$0xff]  }
   0xe   :  { %1293 = vmatmul.mubr.msk.bf16.gmra.mrb[4].mxu0 %vm90_vm0, %v62_v23  ;;  %1323 = vmatpush3.bf16.msra.mxu1 %v1420_v32  ;;  %v74_v54 = vpack.c.bf16 %v58_v52, %v57_v51  ;;  %v1425_v55 = vld [vmem:[%s2269_s3 + $0x30] sm:$0xff]   ;;  %v1426_v56 = vld [vmem:[%s2269_s3 + $0x38] sm:$0xff]   ;;  %v1427_v57 = vld [vmem:[%s2270_s5] sm:$0xff]  }
   0xf   :  { %1296 = vmatprep.mubr.msk.bf16.mxu0 %vm90_vm0, %v63_v26  ;;  %1324 = vmatprep.subr.bf16.mxu1 %v1421_v37  ;;  %v1428_v58 = vld [vmem:[%s2270_s5 + $0x8] sm:$0xff]   ;;  %v1429_v59 = vld [vmem:[%s2270_s5 + $0x10] sm:$0xff]   ;;  %v1430_v60 = vld [vmem:[%s2270_s5 + $0x18] sm:$0xff]  }
  0x10   :  { %1309 = vmatmul.mubr.msk.bf16.gmra.mrb[4].mxu1 %vm90_vm0, %v70_v34  ;;  %1368 = vmatprep.subr.bf16.mxu0 %v1427_v57  ;;  %v1431_v61 = vld [vmem:[%s2270_s5 + $0x20] sm:$0xff]   ;;  %v1432_v62 = vld [vmem:[%s2270_s5 + $0x28] sm:$0xff]  }
  0x11   :  { %1312 = vmatprep.mubr.msk.bf16.mxu1 %vm90_vm0, %v71_v36  ;;  %1369 = vmatpush3.bf16.msra.mxu0 %v1427_v57  ;;  %v1763_v63 = vld [vmem:[%s2271_s2] ss:$0 sm:$0xff] }
  0x12   :  { %1325 = vmatpush3.bf16.msra.mxu1 %v1421_v37  ;;  %1370 = vmatprep.subr.bf16.mxu0 %v1428_v58 }
  0x13   :  { %1326 = vmatprep.subr.bf16.mxu1 %v1422_v44 }
  0x15   :  { %1371 = vmatpush3.bf16.msra.mxu0 %v1428_v58 }
  0x16   :  { %1297 = vmatmul.mubr.msk.bf16.gmra.mrb[8].mxu0 %vm90_vm0, %v64_v38  ;;  %1327 = vmatpush3.bf16.msra.mxu1 %v1422_v44 }
  0x17   :  { %1300 = vmatprep.mubr.msk.bf16.mxu0 %vm90_vm0, %v65_v39  ;;  %1328 = vmatprep.subr.bf16.mxu1 %v1423_v49 }
  0x18   :  { %1313 = vmatmul.mubr.msk.bf16.gmra.mrb[8].mxu1 %vm90_vm0, %v72_v45  ;;  %1372 = vmatprep.subr.bf16.mxu0 %v1429_v59 }
  0x19   :  { %1316 = vmatprep.mubr.msk.bf16.mxu1 %vm90_vm0, %v73_v48  ;;  %1373 = vmatpush3.bf16.msra.mxu0 %v1429_v59 }
  0x1a   :  { %1329 = vmatpush3.bf16.msra.mxu1 %v1423_v49  ;;  %1374 = vmatprep.subr.bf16.mxu0 %v1430_v60 }
  0x1b   :  { %1330 = vmatprep.subr.bf16.mxu1 %v1424_v53 }
  0x1d   :  { %1375 = vmatpush3.bf16.msra.mxu0 %v1430_v60 }
  0x1e   :  { %1301 = vmatmul.mubr.msk.bf16.gmra.mrb[12].mxu0 %vm90_vm0, %v66_v50  ;;  %1331 = vmatpush3.bf16.msra.mxu1 %v1424_v53 }
  0x1f   :  { %1332 = vmatprep.subr.bf16.mxu1 %v1425_v55  ;;  %1376 = vmatprep.subr.bf16.mxu0 %v1431_v61 }
  0x20   :  { %1317 = vmatmul.mubr.msk.bf16.gmra.mrb[12].mxu1 %vm90_vm0, %v74_v54 }
  0x21   :  { %1377 = vmatpush3.bf16.msra.mxu0 %v1431_v61 }
  0x22   :  { %1333 = vmatpush3.bf16.msra.mxu1 %v1425_v55  ;;  %1378 = vmatprep.subr.bf16.mxu0 %v1432_v62 }
  0x23   :  { %1334 = vmatprep.subr.bf16.mxu1 %v1426_v56 }
  0x25   :  { %1379 = vmatpush3.bf16.msra.mxu0 %v1432_v62 }
  0x26   :  { %1335 = vmatpush3.bf16.msra.mxu1 %v1426_v56 }
  0xd9   :  { %v1290_v0 = vpop.f32.mrb[0].mxu0 }
  0xda   :  { %v182_v1 = vadd.f32 %v1290_v0, %v1763_v63  ;;  %v173_v2 = vpop.f32.mrb[1].mxu0 }
  0xdb   :  { %v174_v3 = vadd.f32 %v1763_v63, %v173_v2  ;;  %v1291_v4 = vpop.f32.mrb[2].mxu0  ;;  %v1306_v8 = vpop.f32.mrb[0].mxu1 }
  0xdc   :  { %v185_v5 = vadd.f32 %v1291_v4, %v1763_v63  ;;  %v176_v6 = vpop.f32.mrb[3].mxu0  ;;  %v302_v9 = vmax.f32 %v182_v1, 0.0  ;;  %v246_v11 = vadd.f32 %v1306_v8, %v1763_v63  ;;  %v237_v12 = vpop.f32.mrb[1].mxu1 }
  0xdd   :  { %v177_v7 = vadd.f32 %v1763_v63, %v176_v6  ;;  %v300_v13 = vmax.f32 %v174_v3, 0.0  ;;  %v238_v15 = vadd.f32 %v1763_v63, %v237_v12  ;;  %v1307_v16 = vpop.f32.mrb[2].mxu1 }
  0xde   :  { %v303_v10 = vmax.f32 %v185_v5, 0.0  ;;  %v318_v18 = vmax.f32 %v246_v11, 0.0  ;;  %v249_v19 = vadd.f32 %v1307_v16, %v1763_v63  ;;  %v240_v20 = vpop.f32.mrb[3].mxu1 }
  0xdf   :  { %v301_v14 = vmax.f32 %v177_v7, 0.0  ;;  %v316_v23 = vmax.f32 %v238_v15, 0.0  ;;  %v241_v24 = vadd.f32 %v1763_v63, %v240_v20 }
  0xe0   :  { %v333_v17 = vpack.c.bf16 %v303_v10, %v302_v9  ;;  %v319_v27 = vmax.f32 %v249_v19, 0.0 }
  0xe1   :  { %v332_v21 = vpack.c.bf16 %v301_v14, %v300_v13  ;;  %v1294_v22 = vpop.f32.mrb[4].mxu0  ;;  %v317_v30 = vmax.f32 %v241_v24, 0.0 }
  0xe2   :  { %v198_v25 = vadd.f32 %v1294_v22, %v1763_v63  ;;  %v189_v26 = vpop.f32.mrb[5].mxu0  ;;  %v1776_v34 = vpack.c.bf16 %v319_v27, %v318_v18 }
  0xe3   :  { %v190_v28 = vadd.f32 %v1763_v63, %v189_v26  ;;  %v1295_v29 = vpop.f32.mrb[6].mxu0  ;;  %1336 = vmatprep.mubr.bf16.mxu1 %v332_v21  ;;  %v1779_v36 = vpack.c.bf16 %v317_v30, %v316_v23  ;;  %v1310_v37 = vpop.f32.mrb[4].mxu1 }
  0xe4   :  { %v306_v31 = vmax.f32 %v198_v25, 0.0  ;;  %v201_v32 = vadd.f32 %v1295_v29, %v1763_v63  ;;  %v192_v33 = vpop.f32.mrb[7].mxu0  ;;  %1337 = vmatmul.mubr.bf16.vlgmr.msra.gmra.mrb[16].mxu1 %v333_v17  ;;  %v262_v39 = vadd.f32 %v1310_v37, %v1763_v63  ;;  %v253_v40 = vpop.f32.mrb[5].mxu1 }
  0xe5   :  { %v193_v35 = vadd.f32 %v1763_v63, %v192_v33  ;;  %v304_v41 = vmax.f32 %v190_v28, 0.0  ;;  %v254_v43 = vadd.f32 %v1763_v63, %v253_v40  ;;  %v1311_v44 = vpop.f32.mrb[6].mxu1 }
  0xe6   :  { %v307_v38 = vmax.f32 %v201_v32, 0.0  ;;  %v322_v46 = vmax.f32 %v262_v39, 0.0  ;;  %v265_v47 = vadd.f32 %v1311_v44, %v1763_v63  ;;  %v256_v48 = vpop.f32.mrb[7].mxu1 }
  0xe7   :  { %v305_v42 = vmax.f32 %v193_v35, 0.0  ;;  %v320_v51 = vmax.f32 %v254_v43, 0.0  ;;  %v257_v52 = vadd.f32 %v1763_v63, %v256_v48 }
  0xe8   :  { %v335_v45 = vpack.c.bf16 %v307_v38, %v306_v31  ;;  %v323_v55 = vmax.f32 %v265_v47, 0.0 }
  0xe9   :  { %v334_v49 = vpack.c.bf16 %v305_v42, %v304_v41  ;;  %v1298_v50 = vpop.f32.mrb[8].mxu0  ;;  %v321_v58 = vmax.f32 %v257_v52, 0.0 }
  0xea   :  { %v214_v53 = vadd.f32 %v1298_v50, %v1763_v63  ;;  %v205_v54 = vpop.f32.mrb[9].mxu0  ;;  %v343_v62 = vpack.c.bf16 %v323_v55, %v322_v46 }
  0xeb   :  { %v206_v56 = vadd.f32 %v1763_v63, %v205_v54  ;;  %v1299_v57 = vpop.f32.mrb[10].mxu0  ;;  %1340 = vmatprep.mubr.bf16.mxu1 %v334_v49  ;;  %v342_v1 = vpack.c.bf16 %v321_v58, %v320_v51  ;;  %v1314_v2 = vpop.f32.mrb[8].mxu1  ;;  %v1434_v51 = vld [vmem:[%s2270_s5 + $0x38] sm:$0xff]  }
  0xec   :  { %v310_v59 = vmax.f32 %v214_v53, 0.0  ;;  %v217_v60 = vadd.f32 %v1299_v57, %v1763_v63  ;;  %v208_v61 = vpop.f32.mrb[11].mxu0  ;;  %1341 = vmatmul.mubr.bf16.gmra.mrb[20].mxu1 %v335_v45  ;;  %v278_v4 = vadd.f32 %v1314_v2, %v1763_v63  ;;  %v269_v5 = vpop.f32.mrb[9].mxu1 }
  0xed   :  { %v209_v0 = vadd.f32 %v1763_v63, %v208_v61  ;;  %v308_v6 = vmax.f32 %v206_v56, 0.0  ;;  %v270_v8 = vadd.f32 %v1763_v63, %v269_v5  ;;  %v1315_v9 = vpop.f32.mrb[10].mxu1 }
  0xee   :  { %v311_v3 = vmax.f32 %v217_v60, 0.0  ;;  %v326_v11 = vmax.f32 %v278_v4, 0.0  ;;  %v281_v12 = vadd.f32 %v1315_v9, %v1763_v63  ;;  %v272_v13 = vpop.f32.mrb[11].mxu1 }
  0xef   :  { %v309_v7 = vmax.f32 %v209_v0, 0.0  ;;  %v324_v16 = vmax.f32 %v270_v8, 0.0  ;;  %v273_v17 = vadd.f32 %v1763_v63, %v272_v13 }
  0xf0   :  { %v337_v10 = vpack.c.bf16 %v311_v3, %v310_v59  ;;  %v327_v20 = vmax.f32 %v281_v12, 0.0 }
  0xf1   :  { %v336_v14 = vpack.c.bf16 %v309_v7, %v308_v6  ;;  %v1302_v15 = vpop.f32.mrb[12].mxu0  ;;  %v325_v23 = vmax.f32 %v273_v17, 0.0 }
  0xf2   :  { %v230_v18 = vadd.f32 %v1302_v15, %v1763_v63  ;;  %v221_v19 = vpop.f32.mrb[13].mxu0  ;;  %v345_v27 = vpack.c.bf16 %v327_v20, %v326_v11 }
  0xf3   :  { %v222_v21 = vadd.f32 %v1763_v63, %v221_v19  ;;  %v1303_v22 = vpop.f32.mrb[14].mxu0  ;;  %1344 = vmatprep.mubr.bf16.mxu1 %v336_v14  ;;  %v344_v29 = vpack.c.bf16 %v325_v23, %v324_v16  ;;  %v1318_v30 = vpop.f32.mrb[12].mxu1 }
  0xf4   :  { %v314_v24 = vmax.f32 %v230_v18, 0.0  ;;  %v233_v25 = vadd.f32 %v1303_v22, %v1763_v63  ;;  %v224_v26 = vpop.f32.mrb[15].mxu0  ;;  %1345 = vmatmul.mubr.bf16.gmra.mrb[24].mxu1 %v337_v10  ;;  %v294_v32 = vadd.f32 %v1318_v30, %v1763_v63  ;;  %v285_v33 = vpop.f32.mrb[13].mxu1 }
  0xf5   :  { %v225_v28 = vadd.f32 %v1763_v63, %v224_v26  ;;  %v312_v35 = vmax.f32 %v222_v21, 0.0  ;;  %v286_v38 = vadd.f32 %v1763_v63, %v285_v33  ;;  %v1319_v39 = vpop.f32.mrb[14].mxu1 }
  0xf6   :  { %v315_v31 = vmax.f32 %v233_v25, 0.0  ;;  %v330_v41 = vmax.f32 %v294_v32, 0.0  ;;  %v297_v42 = vadd.f32 %v1319_v39, %v1763_v63  ;;  %v288_v43 = vpop.f32.mrb[15].mxu1 }
  0xf7   :  { %v313_v37 = vmax.f32 %v225_v28, 0.0  ;;  %v328_v45 = vmax.f32 %v286_v38, 0.0  ;;  %v289_v46 = vadd.f32 %v1763_v63, %v288_v43  ;;  %v1433_v63 = vld [vmem:[%s2270_s5 + $0x30] sm:$0xff]  }
  0xf8   :  { %v339_v40 = vpack.c.bf16 %v315_v31, %v314_v24  ;;  %v331_v47 = vmax.f32 %v297_v42, 0.0  ;;  %1380 = vmatprep.subr.bf16.mxu0 %v1433_v63 }
  0xf9   :  { %v338_v44 = vpack.c.bf16 %v313_v37, %v312_v35  ;;  %v329_v48 = vmax.f32 %v289_v46, 0.0  ;;  %1381 = vmatpush3.bf16.msra.mxu0 %v1433_v63 }
  0xfa   :  { %v347_v49 = vpack.c.bf16 %v331_v47, %v330_v41  ;;  %1382 = vmatprep.subr.bf16.mxu0 %v1434_v51 }
  0xfb   :  { %1348 = vmatprep.mubr.bf16.mxu1 %v338_v44  ;;  %v346_v50 = vpack.c.bf16 %v329_v48, %v328_v45 }
  0xfc   :  { %1349 = vmatmul.mubr.bf16.gmra.mrb[28].mxu1 %v339_v40 }
  0xfd   :  { %1352 = vmatprep.mubr.bf16.mxu1 %v1779_v36  ;;  %1383 = vmatpush3.bf16.msra.mxu0 %v1434_v51 }
 0x104   :  { %1353 = vmatmul.mubr.bf16.gmra.mrb[32].mxu1 %v1776_v34  ;;  %v1812_v34 = vld [vmem:[%s2272_s4] ss:$0 sm:$0xff] }
 0x105   :  { %1356 = vmatprep.mubr.bf16.mxu1 %v342_v1 }
 0x10c   :  { %1357 = vmatmul.mubr.bf16.gmra.mrb[36].mxu1 %v343_v62 }
 0x10d   :  { %1360 = vmatprep.mubr.bf16.mxu1 %v344_v29 }
 0x114   :  { %1361 = vmatmul.mubr.bf16.gmra.mrb[40].mxu1 %v345_v27 }
 0x115   :  { %1364 = vmatprep.mubr.bf16.mxu1 %v346_v50 }
 0x11c   :  { %1365 = vmatmul.mubr.bf16.gmra.mrb[44].mxu1 %v347_v49 }
 0x1b7   :  { %v1338_v36 = vpop.f32.mrb[16].mxu1 }
 0x1b8   :  { %v462_v52 = vadd.f32 %v1338_v36, %v1812_v34  ;;  %v453_v53 = vpop.f32.mrb[17].mxu1 }
 0x1b9   :  { %v454_v54 = vadd.f32 %v1812_v34, %v453_v53  ;;  %v1339_v55 = vpop.f32.mrb[18].mxu1 }
 0x1ba   :  { %v465_v56 = vadd.f32 %v1339_v55, %v1812_v34  ;;  %v456_v57 = vpop.f32.mrb[19].mxu1  ;;  %v582_v59 = vmax.f32 %v462_v52, 0.0 }
 0x1bb   :  { %v457_v58 = vadd.f32 %v1812_v34, %v456_v57  ;;  %v580_v61 = vmax.f32 %v454_v54, 0.0 }
 0x1bc   :  { %v583_v60 = vmax.f32 %v465_v56, 0.0 }
 0x1bd   :  { %v581_v62 = vmax.f32 %v457_v58, 0.0 }
 0x1be   :  { %v613_v0 = vpack.c.bf16 %v583_v60, %v582_v59 }
 0x1bf   :  { %v612_v1 = vpack.c.bf16 %v581_v62, %v580_v61  ;;  %v1342_v2 = vpop.f32.mrb[20].mxu1 }
 0x1c0   :  { %v478_v3 = vadd.f32 %v1342_v2, %v1812_v34  ;;  %v469_v4 = vpop.f32.mrb[21].mxu1 }
 0x1c1   :  { %v470_v5 = vadd.f32 %v1812_v34, %v469_v4  ;;  %v1343_v6 = vpop.f32.mrb[22].mxu1  ;;  %1384 = vmatprep.mubr.bf16.mxu0 %v612_v1 }
 0x1c2   :  { %v481_v7 = vadd.f32 %v1343_v6, %v1812_v34  ;;  %v472_v8 = vpop.f32.mrb[23].mxu1  ;;  %1385 = vmatmul.mubr.bf16.vlgmr.msra.gmra.mrb[16].mxu0 %v613_v0  ;;  %v586_v10 = vmax.f32 %v478_v3, 0.0 }
 0x1c3   :  { %v473_v9 = vadd.f32 %v1812_v34, %v472_v8  ;;  %v584_v12 = vmax.f32 %v470_v5, 0.0 }
 0x1c4   :  { %v587_v11 = vmax.f32 %v481_v7, 0.0 }
 0x1c5   :  { %v585_v13 = vmax.f32 %v473_v9, 0.0 }
 0x1c6   :  { %v615_v14 = vpack.c.bf16 %v587_v11, %v586_v10 }
 0x1c7   :  { %v614_v15 = vpack.c.bf16 %v585_v13, %v584_v12  ;;  %v1346_v16 = vpop.f32.mrb[24].mxu1 }
 0x1c8   :  { %v494_v17 = vadd.f32 %v1346_v16, %v1812_v34  ;;  %v485_v18 = vpop.f32.mrb[25].mxu1 }
 0x1c9   :  { %v486_v19 = vadd.f32 %v1812_v34, %v485_v18  ;;  %v1347_v20 = vpop.f32.mrb[26].mxu1  ;;  %1388 = vmatprep.mubr.bf16.mxu0 %v614_v15 }
 0x1ca   :  { %v497_v21 = vadd.f32 %v1347_v20, %v1812_v34  ;;  %v488_v22 = vpop.f32.mrb[27].mxu1  ;;  %1389 = vmatmul.mubr.bf16.gmra.mrb[20].mxu0 %v615_v14  ;;  %v590_v24 = vmax.f32 %v494_v17, 0.0 }
 0x1cb   :  { %v489_v23 = vadd.f32 %v1812_v34, %v488_v22  ;;  %v588_v26 = vmax.f32 %v486_v19, 0.0 }
 0x1cc   :  { %v591_v25 = vmax.f32 %v497_v21, 0.0 }
 0x1cd   :  { %v589_v27 = vmax.f32 %v489_v23, 0.0 }
 0x1ce   :  { %v617_v28 = vpack.c.bf16 %v591_v25, %v590_v24 }
 0x1cf   :  { %v616_v29 = vpack.c.bf16 %v589_v27, %v588_v26  ;;  %v1350_v30 = vpop.f32.mrb[28].mxu1 }
 0x1d0   :  { %v510_v31 = vadd.f32 %v1350_v30, %v1812_v34  ;;  %v501_v32 = vpop.f32.mrb[29].mxu1 }
 0x1d1   :  { %v502_v33 = vadd.f32 %v1812_v34, %v501_v32  ;;  %v1351_v35 = vpop.f32.mrb[30].mxu1  ;;  %1392 = vmatprep.mubr.bf16.mxu0 %v616_v29 }
 0x1d2   :  { %v513_v37 = vadd.f32 %v1351_v35, %v1812_v34  ;;  %v504_v38 = vpop.f32.mrb[31].mxu1  ;;  %1393 = vmatmul.mubr.bf16.gmra.mrb[24].mxu0 %v617_v28  ;;  %v594_v40 = vmax.f32 %v510_v31, 0.0 }
 0x1d3   :  { %v505_v39 = vadd.f32 %v1812_v34, %v504_v38  ;;  %v592_v42 = vmax.f32 %v502_v33, 0.0 }
 0x1d4   :  { %v595_v41 = vmax.f32 %v513_v37, 0.0 }
 0x1d5   :  { %v593_v43 = vmax.f32 %v505_v39, 0.0  ;;  %v1849_v39 = vld [vmem:[%s2273_s6] ss:$0 sm:$0xff] }
 0x1d6   :  { %v619_v44 = vpack.c.bf16 %v595_v41, %v594_v40 }
 0x1d7   :  { %v618_v45 = vpack.c.bf16 %v593_v43, %v592_v42  ;;  %v1354_v46 = vpop.f32.mrb[32].mxu1 }
 0x1d8   :  { %v526_v47 = vadd.f32 %v1354_v46, %v1812_v34  ;;  %v517_v48 = vpop.f32.mrb[33].mxu1 }
 0x1d9   :  { %v518_v49 = vadd.f32 %v1812_v34, %v517_v48  ;;  %v1355_v50 = vpop.f32.mrb[34].mxu1  ;;  %1396 = vmatprep.mubr.bf16.mxu0 %v618_v45 }
 0x1da   :  { %v529_v63 = vadd.f32 %v1355_v50, %v1812_v34  ;;  %v520_v51 = vpop.f32.mrb[35].mxu1  ;;  %1397 = vmatmul.mubr.bf16.gmra.mrb[28].mxu0 %v619_v44  ;;  %v598_v52 = vmax.f32 %v526_v47, 0.0 }
 0x1db   :  { %v521_v36 = vadd.f32 %v1812_v34, %v520_v51  ;;  %v596_v54 = vmax.f32 %v518_v49, 0.0 }
 0x1dc   :  { %v599_v53 = vmax.f32 %v529_v63, 0.0 }
 0x1dd   :  { %v597_v55 = vmax.f32 %v521_v36, 0.0 }
 0x1de   :  { %v621_v56 = vpack.c.bf16 %v599_v53, %v598_v52 }
 0x1df   :  { %v620_v57 = vpack.c.bf16 %v597_v55, %v596_v54  ;;  %v1358_v58 = vpop.f32.mrb[36].mxu1 }
 0x1e0   :  { %v542_v59 = vadd.f32 %v1358_v58, %v1812_v34  ;;  %v533_v60 = vpop.f32.mrb[37].mxu1 }
 0x1e1   :  { %v534_v61 = vadd.f32 %v1812_v34, %v533_v60  ;;  %v1359_v62 = vpop.f32.mrb[38].mxu1  ;;  %1400 = vmatprep.mubr.bf16.mxu0 %v620_v57 }
 0x1e2   :  { %v545_v0 = vadd.f32 %v1359_v62, %v1812_v34  ;;  %v536_v1 = vpop.f32.mrb[39].mxu1  ;;  %1401 = vmatmul.mubr.bf16.gmra.mrb[32].mxu0 %v621_v56  ;;  %v602_v3 = vmax.f32 %v542_v59, 0.0 }
 0x1e3   :  { %v537_v2 = vadd.f32 %v1812_v34, %v536_v1  ;;  %v600_v5 = vmax.f32 %v534_v61, 0.0 }
 0x1e4   :  { %v603_v4 = vmax.f32 %v545_v0, 0.0 }
 0x1e5   :  { %v601_v6 = vmax.f32 %v537_v2, 0.0 }
 0x1e6   :  { %v623_v7 = vpack.c.bf16 %v603_v4, %v602_v3 }
 0x1e7   :  { %v622_v8 = vpack.c.bf16 %v601_v6, %v600_v5  ;;  %v1362_v9 = vpop.f32.mrb[40].mxu1 }
 0x1e8   :  { %v558_v10 = vadd.f32 %v1362_v9, %v1812_v34  ;;  %v549_v11 = vpop.f32.mrb[41].mxu1 }
 0x1e9   :  { %v550_v12 = vadd.f32 %v1812_v34, %v549_v11  ;;  %v1363_v13 = vpop.f32.mrb[42].mxu1  ;;  %1404 = vmatprep.mubr.bf16.mxu0 %v622_v8 }
 0x1ea   :  { %v561_v14 = vadd.f32 %v1363_v13, %v1812_v34  ;;  %v552_v15 = vpop.f32.mrb[43].mxu1  ;;  %1405 = vmatmul.mubr.bf16.gmra.mrb[36].mxu0 %v623_v7  ;;  %v606_v17 = vmax.f32 %v558_v10, 0.0 }
 0x1eb   :  { %v553_v16 = vadd.f32 %v1812_v34, %v552_v15  ;;  %v604_v19 = vmax.f32 %v550_v12, 0.0 }
 0x1ec   :  { %v607_v18 = vmax.f32 %v561_v14, 0.0 }
 0x1ed   :  { %v605_v20 = vmax.f32 %v553_v16, 0.0 }
 0x1ee   :  { %v625_v21 = vpack.c.bf16 %v607_v18, %v606_v17 }
 0x1ef   :  { %v624_v22 = vpack.c.bf16 %v605_v20, %v604_v19  ;;  %v1366_v23 = vpop.f32.mrb[44].mxu1 }
 0x1f0   :  { %v574_v24 = vadd.f32 %v1366_v23, %v1812_v34  ;;  %v565_v25 = vpop.f32.mrb[45].mxu1 }
 0x1f1   :  { %v566_v26 = vadd.f32 %v1812_v34, %v565_v25  ;;  %v1367_v27 = vpop.f32.mrb[46].mxu1  ;;  %1408 = vmatprep.mubr.bf16.mxu0 %v624_v22 }
 0x1f2   :  { %v577_v28 = vadd.f32 %v1367_v27, %v1812_v34  ;;  %v568_v29 = vpop.f32.mrb[47].mxu1  ;;  %1409 = vmatmul.mubr.bf16.gmra.mrb[40].mxu0 %v625_v21  ;;  %v610_v31 = vmax.f32 %v574_v24, 0.0 }
 0x1f3   :  { %v569_v30 = vadd.f32 %v1812_v34, %v568_v29  ;;  %v608_v33 = vmax.f32 %v566_v26, 0.0 }
 0x1f4   :  { %v611_v32 = vmax.f32 %v577_v28, 0.0 }
 0x1f5   :  { %v609_v35 = vmax.f32 %v569_v30, 0.0 }
 0x1f6   :  { %v627_v37 = vpack.c.bf16 %v611_v32, %v610_v31 }
 0x1f7   :  { %v626_v38 = vpack.c.bf16 %v609_v35, %v608_v33 }
 0x1f9   :  { %1412 = vmatprep.mubr.bf16.mxu0 %v626_v38 }
 0x1fa   :  { %1413 = vmatmul.mubr.bf16.gmra.mrb[44].mxu0 %v627_v37 }
 0x295   :  { %v1386_v40 = vpop.f32.mrb[16].mxu0 }
 0x296   :  { %v1852_v41 = vadd.f32 %v1386_v40, %v1849_v39  ;;  %v733_v42 = vpop.f32.mrb[17].mxu0 }
 0x297   :  { %v1855_v34 = vadd.f32 %v1849_v39, %v733_v42  ;;  %v1387_v43 = vpop.f32.mrb[18].mxu0 }
 0x298   :  { %864 = vmax.xlane.f32.xlu1 %v1852_v41  ;;  %v736_v44 = vpop.f32.mrb[19].mxu0  ;;  %v1860_v45 = vadd.f32 %v1387_v43, %v1849_v39 }
 0x299   :  { %860 = vmax.xlane.f32.xlu0 %v1855_v34  ;;  %v1863_v46 = vadd.f32 %v1849_v39, %v736_v44 }
 0x29c   :  { %866 = vmax.xlane.f32.xlu1 %v1860_v45 }
 0x29d   :  { %v1390_v47 = vpop.f32.mrb[20].mxu0  ;;  %862 = vmax.xlane.f32.xlu0 %v1863_v46 }
 0x29e   :  { %v1868_v48 = vadd.f32 %v1390_v47, %v1849_v39  ;;  %v749_v49 = vpop.f32.mrb[21].mxu0 }
 0x29f   :  { %v1391_v50 = vpop.f32.mrb[22].mxu0  ;;  %v1876_v36 = vadd.f32 %v1849_v39, %v749_v49 }
 0x2a0   :  { %v1871_v63 = vadd.f32 %v1391_v50, %v1849_v39  ;;  %v752_v51 = vpop.f32.mrb[23].mxu0 }
 0x2a1   :  { %872 = vmax.xlane.f32.xlu0 %v1868_v48  ;;  %v1879_v52 = vadd.f32 %v1849_v39, %v752_v51 }
 0x2a2   :  { %874 = vmax.xlane.f32.xlu1 %v1871_v63 }
 0x2a5   :  { %v1394_v53 = vpop.f32.mrb[24].mxu0  ;;  %868 = vmax.xlane.f32.xlu0 %v1876_v36 }
 0x2a6   :  { %v1883_v54 = vadd.f32 %v1394_v53, %v1849_v39  ;;  %v765_v55 = vpop.f32.mrb[25].mxu0  ;;  %870 = vmax.xlane.f32.xlu1 %v1879_v52 }
 0x2a7   :  { %v1395_v56 = vpop.f32.mrb[26].mxu0  ;;  %v1892_v59 = vadd.f32 %v1849_v39, %v765_v55 }
 0x2a8   :  { %v1887_v57 = vadd.f32 %v1395_v56, %v1849_v39  ;;  %v768_v58 = vpop.f32.mrb[27].mxu0 }
 0x2a9   :  { %880 = vmax.xlane.f32.xlu0 %v1883_v54  ;;  %v1895_v60 = vadd.f32 %v1849_v39, %v768_v58 }
 0x2aa   :  { %882 = vmax.xlane.f32.xlu1 %v1887_v57 }
 0x2ad   :  { %v1398_v61 = vpop.f32.mrb[28].mxu0  ;;  %876 = vmax.xlane.f32.xlu0 %v1892_v59 }
 0x2ae   :  { %v1899_v62 = vadd.f32 %v1398_v61, %v1849_v39  ;;  %v781_v0 = vpop.f32.mrb[29].mxu0  ;;  %878 = vmax.xlane.f32.xlu1 %v1895_v60 }
 0x2af   :  { %v1399_v1 = vpop.f32.mrb[30].mxu0  ;;  %v1908_v4 = vadd.f32 %v1849_v39, %v781_v0 }
 0x2b0   :  { %v1903_v2 = vadd.f32 %v1399_v1, %v1849_v39  ;;  %v784_v3 = vpop.f32.mrb[31].mxu0 }
 0x2b1   :  { %888 = vmax.xlane.f32.xlu0 %v1899_v62  ;;  %v1911_v5 = vadd.f32 %v1849_v39, %v784_v3 }
 0x2b2   :  { %890 = vmax.xlane.f32.xlu1 %v1903_v2 }
 0x2b5   :  { %v1402_v6 = vpop.f32.mrb[32].mxu0  ;;  %884 = vmax.xlane.f32.xlu0 %v1908_v4 }
 0x2b6   :  { %v1915_v7 = vadd.f32 %v1402_v6, %v1849_v39  ;;  %v797_v8 = vpop.f32.mrb[33].mxu0  ;;  %886 = vmax.xlane.f32.xlu1 %v1911_v5 }
 0x2b7   :  { %v1403_v9 = vpop.f32.mrb[34].mxu0  ;;  %v1924_v12 = vadd.f32 %v1849_v39, %v797_v8 }
 0x2b8   :  { %v1919_v10 = vadd.f32 %v1403_v9, %v1849_v39  ;;  %v800_v11 = vpop.f32.mrb[35].mxu0 }
 0x2b9   :  { %896 = vmax.xlane.f32.xlu0 %v1915_v7  ;;  %v1927_v13 = vadd.f32 %v1849_v39, %v800_v11 }
 0x2ba   :  { %898 = vmax.xlane.f32.xlu1 %v1919_v10 }
 0x2bd   :  { %v1406_v14 = vpop.f32.mrb[36].mxu0  ;;  %892 = vmax.xlane.f32.xlu0 %v1924_v12 }
 0x2be   :  { %v1931_v15 = vadd.f32 %v1406_v14, %v1849_v39  ;;  %v813_v16 = vpop.f32.mrb[37].mxu0  ;;  %894 = vmax.xlane.f32.xlu1 %v1927_v13 }
 0x2bf   :  { %v1407_v17 = vpop.f32.mrb[38].mxu0  ;;  %v1940_v20 = vadd.f32 %v1849_v39, %v813_v16 }
 0x2c0   :  { %v1935_v18 = vadd.f32 %v1407_v17, %v1849_v39  ;;  %v816_v19 = vpop.f32.mrb[39].mxu0 }
 0x2c1   :  { %904 = vmax.xlane.f32.xlu0 %v1931_v15  ;;  %v1943_v21 = vadd.f32 %v1849_v39, %v816_v19 }
 0x2c2   :  { %906 = vmax.xlane.f32.xlu1 %v1935_v18 }
 0x2c5   :  { %v1410_v22 = vpop.f32.mrb[40].mxu0  ;;  %900 = vmax.xlane.f32.xlu0 %v1940_v20 }
 0x2c6   :  { %v1947_v23 = vadd.f32 %v1410_v22, %v1849_v39  ;;  %v829_v24 = vpop.f32.mrb[41].mxu0  ;;  %902 = vmax.xlane.f32.xlu1 %v1943_v21 }
 0x2c7   :  { %v1411_v25 = vpop.f32.mrb[42].mxu0  ;;  %v1956_v28 = vadd.f32 %v1849_v39, %v829_v24 }
 0x2c8   :  { %v1951_v26 = vadd.f32 %v1411_v25, %v1849_v39  ;;  %v832_v27 = vpop.f32.mrb[43].mxu0 }
 0x2c9   :  { %912 = vmax.xlane.f32.xlu0 %v1947_v23  ;;  %v1959_v29 = vadd.f32 %v1849_v39, %v832_v27 }
 0x2ca   :  { %914 = vmax.xlane.f32.xlu1 %v1951_v26 }
 0x2cd   :  { %v1414_v30 = vpop.f32.mrb[44].mxu0  ;;  %908 = vmax.xlane.f32.xlu0 %v1956_v28 }
 0x2ce   :  { %v845_v31 = vpop.f32.mrb[45].mxu0  ;;  %910 = vmax.xlane.f32.xlu1 %v1959_v29  ;;  %v1971_v38 = vadd.f32 %v1414_v30, %v1849_v39 }
 0x2cf   :  { %v1964_v32 = vadd.f32 %v1849_v39, %v845_v31  ;;  %v1415_v33 = vpop.f32.mrb[46].mxu0 }
 0x2d0   :  { %v848_v35 = vpop.f32.mrb[47].mxu0  ;;  %v1975_v40 = vadd.f32 %v1415_v33, %v1849_v39 }
 0x2d1   :  { %v1967_v37 = vadd.f32 %v1849_v39, %v848_v35  ;;  %916 = vmax.xlane.f32.xlu0 %v1964_v32 }
 0x2d3   :  { %918 = vmax.xlane.f32.xlu1 %v1967_v37 }
 0x2d5   :  { %920 = vmax.xlane.f32.xlu0 %v1971_v38 }
 0x2d7   :  { %922 = vmax.xlane.f32.xlu1 %v1975_v40 }
 0x325   :  { %v865_v42 = vpop.xlane.xlu1 %864 }
 0x326   :  { %v926_v43 = vsub.f32 %v1852_v41, %v865_v42  ;;  %v861_v44 = vpop.xlane.xlu0 %860 }
 0x327   :  { %v924_v47 = vsub.f32 %v1855_v34, %v861_v44 }
 0x328   :  { %v960_v49 = vmul.f32 1.442695, %v926_v43 }
 0x329   :  { %v956_v50 = vmul.f32 1.442695, %v924_v47  ;;  %v867_v51 = vpop.xlane.xlu1 %866 }
 0x32a   :  { %1435 = vpow2.f32 %v960_v49  ;;  %v927_v53 = vsub.f32 %v1860_v45, %v867_v51  ;;  %v863_v55 = vpop.xlane.xlu0 %862 }
 0x32b   :  { %v925_v39 = vsub.f32 %v1863_v46, %v863_v55  ;;  %1437 = vpow2.f32 %v956_v50 }
 0x32c   :  { %v962_v56 = vmul.f32 1.442695, %v927_v53 }
 0x32d   :  { %v958_v58 = vmul.f32 1.442695, %v925_v39 }
 0x32e   :  { %1439 = vpow2.f32 %v962_v56  ;;  %v873_v61 = vpop.xlane.xlu0 %872 }
 0x32f   :  { %v930_v0 = vsub.f32 %v1868_v48, %v873_v61  ;;  %v875_v41 = vpop.xlane.xlu1 %874  ;;  %1441 = vpow2.f32 %v958_v58 }
 0x330   :  { %v931_v1 = vsub.f32 %v1871_v63, %v875_v41 }
 0x331   :  { %v968_v34 = vmul.f32 1.442695, %v930_v0 }
 0x332   :  { %v970_v3 = vmul.f32 1.442695, %v931_v1  ;;  %v869_v6 = vpop.xlane.xlu0 %868 }
 0x333   :  { %1443 = vpow2.f32 %v968_v34  ;;  %v928_v45 = vsub.f32 %v1876_v36, %v869_v6  ;;  %v871_v8 = vpop.xlane.xlu1 %870 }
 0x334   :  { %v1986_v9 = vpop.eup %1435  ;;  %v929_v46 = vsub.f32 %v1879_v52, %v871_v8  ;;  %1445 = vpow2.f32 %v970_v3 }
 0x335   :  { %v964_v11 = vmul.f32 1.442695, %v928_v45  ;;  %1024 = vadd.xlane.f32.xlu0 %v1986_v9  ;;  %v1990_v16 = vpop.eup %1437 }
 0x336   :  { %v966_v48 = vmul.f32 1.442695, %v929_v46  ;;  %v881_v14 = vpop.xlane.xlu0 %880 }
 0x337   :  { %1447 = vpow2.f32 %v964_v11  ;;  %v934_v63 = vsub.f32 %v1883_v54, %v881_v14  ;;  %v883_v17 = vpop.xlane.xlu1 %882 }
 0x338   :  { %v1993_v19 = vpop.eup %1439  ;;  %v935_v36 = vsub.f32 %v1887_v57, %v883_v17  ;;  %1449 = vpow2.f32 %v966_v48 }
 0x339   :  { %v976_v22 = vmul.f32 1.442695, %v934_v63  ;;  %1026 = vadd.xlane.f32.xlu1 %v1993_v19  ;;  %1020 = vadd.xlane.f32.xlu0 %v1990_v16  ;;  %v1999_v30 = vpop.eup %1441 }
 0x33a   :  { %v978_v52 = vmul.f32 1.442695, %v935_v36  ;;  %v877_v24 = vpop.xlane.xlu0 %876 }
 0x33b   :  { %1451 = vpow2.f32 %v976_v22  ;;  %v932_v25 = vsub.f32 %v1892_v59, %v877_v24  ;;  %v879_v27 = vpop.xlane.xlu1 %878 }
 0x33c   :  { %v933_v54 = vsub.f32 %v1895_v60, %v879_v27  ;;  %1453 = vpow2.f32 %v978_v52 }
 0x33d   :  { %v2002_v31 = vpop.eup %1443  ;;  %v972_v33 = vmul.f32 1.442695, %v932_v25  ;;  %1022 = vadd.xlane.f32.xlu1 %v1999_v30 }
 0x33e   :  { %v974_v57 = vmul.f32 1.442695, %v933_v54  ;;  %1032 = vadd.xlane.f32.xlu0 %v2002_v31  ;;  %v889_v35 = vpop.xlane.xlu0 %888  ;;  %v2007_v59 = vpop.eup %1445 }
 0x33f   :  { %1455 = vpow2.f32 %v972_v33  ;;  %v938_v42 = vsub.f32 %v1899_v62, %v889_v35  ;;  %v891_v43 = vpop.xlane.xlu1 %890 }
 0x340   :  { %v939_v44 = vsub.f32 %v1903_v2, %v891_v43  ;;  %1457 = vpow2.f32 %v974_v57 }
 0x341   :  { %v2010_v47 = vpop.eup %1447  ;;  %v984_v60 = vmul.f32 1.442695, %v938_v42  ;;  %1034 = vadd.xlane.f32.xlu1 %v2007_v59 }
 0x342   :  { %v986_v49 = vmul.f32 1.442695, %v939_v44  ;;  %1028 = vadd.xlane.f32.xlu0 %v2010_v47  ;;  %v885_v50 = vpop.xlane.xlu0 %884  ;;  %v2015_v62 = vpop.eup %1449 }
 0x343   :  { %1459 = vpow2.f32 %v984_v60  ;;  %v936_v51 = vsub.f32 %v1908_v4, %v885_v50  ;;  %v887_v53 = vpop.xlane.xlu1 %886 }
 0x344   :  { %v937_v55 = vsub.f32 %v1911_v5, %v887_v53  ;;  %1461 = vpow2.f32 %v986_v49 }
 0x345   :  { %v2018_v39 = vpop.eup %1451  ;;  %v980_v2 = vmul.f32 1.442695, %v936_v51  ;;  %1030 = vadd.xlane.f32.xlu1 %v2015_v62 }
 0x346   :  { %v982_v56 = vmul.f32 1.442695, %v937_v55  ;;  %1040 = vadd.xlane.f32.xlu0 %v2018_v39  ;;  %v897_v58 = vpop.xlane.xlu0 %896  ;;  %v2023_v4 = vpop.eup %1453 }
 0x347   :  { %1463 = vpow2.f32 %v980_v2  ;;  %v942_v61 = vsub.f32 %v1915_v7, %v897_v58  ;;  %v899_v0 = vpop.xlane.xlu1 %898 }
 0x348   :  { %v943_v41 = vsub.f32 %v1919_v10, %v899_v0  ;;  %1465 = vpow2.f32 %v982_v56 }
 0x349   :  { %v2026_v1 = vpop.eup %1455  ;;  %v992_v5 = vmul.f32 1.442695, %v942_v61  ;;  %1042 = vadd.xlane.f32.xlu1 %v2023_v4 }
 0x34a   :  { %v994_v34 = vmul.f32 1.442695, %v943_v41  ;;  %1036 = vadd.xlane.f32.xlu0 %v2026_v1  ;;  %v893_v3 = vpop.xlane.xlu0 %892  ;;  %v2031_v7 = vpop.eup %1457 }
 0x34b   :  { %1467 = vpow2.f32 %v992_v5  ;;  %v940_v6 = vsub.f32 %v1924_v12, %v893_v3  ;;  %v895_v45 = vpop.xlane.xlu1 %894 }
 0x34c   :  { %v941_v8 = vsub.f32 %v1927_v13, %v895_v45  ;;  %1469 = vpow2.f32 %v994_v34 }
 0x34d   :  { %v2034_v46 = vpop.eup %1459  ;;  %v988_v10 = vmul.f32 1.442695, %v940_v6  ;;  %1038 = vadd.xlane.f32.xlu1 %v2031_v7 }
 0x34e   :  { %v990_v11 = vmul.f32 1.442695, %v941_v8  ;;  %1048 = vadd.xlane.f32.xlu0 %v2034_v46  ;;  %v905_v48 = vpop.xlane.xlu0 %904  ;;  %v2039_v12 = vpop.eup %1461 }
 0x34f   :  { %1471 = vpow2.f32 %v988_v10  ;;  %v946_v14 = vsub.f32 %v1931_v15, %v905_v48  ;;  %v907_v63 = vpop.xlane.xlu1 %906 }
 0x350   :  { %v947_v17 = vsub.f32 %v1935_v18, %v907_v63  ;;  %1473 = vpow2.f32 %v990_v11 }
 0x351   :  { %v2042_v36 = vpop.eup %1463  ;;  %v1000_v13 = vmul.f32 1.442695, %v946_v14  ;;  %1050 = vadd.xlane.f32.xlu1 %v2039_v12 }
 0x352   :  { %v1002_v22 = vmul.f32 1.442695, %v947_v17  ;;  %1044 = vadd.xlane.f32.xlu0 %v2042_v36  ;;  %v901_v52 = vpop.xlane.xlu0 %900  ;;  %v2047_v15 = vpop.eup %1465 }
 0x353   :  { %1475 = vpow2.f32 %v1000_v13  ;;  %v944_v24 = vsub.f32 %v1940_v20, %v901_v52  ;;  %v903_v25 = vpop.xlane.xlu1 %902 }
 0x354   :  { %v945_v27 = vsub.f32 %v1943_v21, %v903_v25  ;;  %1477 = vpow2.f32 %v1002_v22 }
 0x355   :  { %v2050_v54 = vpop.eup %1467  ;;  %v996_v18 = vmul.f32 1.442695, %v944_v24  ;;  %1046 = vadd.xlane.f32.xlu1 %v2047_v15 }
 0x356   :  { %v998_v33 = vmul.f32 1.442695, %v945_v27  ;;  %1056 = vadd.xlane.f32.xlu0 %v2050_v54  ;;  %v913_v57 = vpop.xlane.xlu0 %912  ;;  %v2055_v20 = vpop.eup %1469 }
 0x357   :  { %1479 = vpow2.f32 %v996_v18  ;;  %v950_v35 = vsub.f32 %v1947_v23, %v913_v57  ;;  %v915_v42 = vpop.xlane.xlu1 %914 }
 0x358   :  { %v951_v43 = vsub.f32 %v1951_v26, %v915_v42  ;;  %1481 = vpow2.f32 %v998_v33 }
 0x359   :  { %v2058_v44 = vpop.eup %1471  ;;  %v1008_v21 = vmul.f32 1.442695, %v950_v35  ;;  %1058 = vadd.xlane.f32.xlu1 %v2055_v20 }
 0x35a   :  { %v1010_v60 = vmul.f32 1.442695, %v951_v43  ;;  %1052 = vadd.xlane.f32.xlu0 %v2058_v44  ;;  %v909_v49 = vpop.xlane.xlu0 %908  ;;  %v2063_v23 = vpop.eup %1473 }
 0x35b   :  { %1483 = vpow2.f32 %v1008_v21  ;;  %v948_v50 = vsub.f32 %v1956_v28, %v909_v49  ;;  %v911_v51 = vpop.xlane.xlu1 %910 }
 0x35c   :  { %v949_v53 = vsub.f32 %v1959_v29, %v911_v51  ;;  %1485 = vpow2.f32 %v1010_v60 }
 0x35d   :  { %v2066_v55 = vpop.eup %1475  ;;  %v1004_v26 = vmul.f32 1.442695, %v948_v50  ;;  %1054 = vadd.xlane.f32.xlu1 %v2063_v23 }
 0x35e   :  { %v1006_v2 = vmul.f32 1.442695, %v949_v53  ;;  %1064 = vadd.xlane.f32.xlu0 %v2066_v55  ;;  %v917_v56 = vpop.xlane.xlu0 %916  ;;  %v2071_v61 = vpop.eup %1477 }
 0x35f   :  { %1487 = vpow2.f32 %v1004_v26  ;;  %v952_v58 = vsub.f32 %v1964_v32, %v917_v56 }
 0x360   :  { %v919_v28 = vpop.xlane.xlu1 %918  ;;  %1489 = vpow2.f32 %v1006_v2 }
 0x361   :  { %v2073_v0 = vpop.eup %1479  ;;  %v1012_v41 = vmul.f32 1.442695, %v952_v58  ;;  %v953_v29 = vsub.f32 %v1967_v37, %v919_v28  ;;  %1066 = vadd.xlane.f32.xlu1 %v2071_v61 }
 0x362   :  { %1060 = vadd.xlane.f32.xlu0 %v2073_v0  ;;  %v921_v5 = vpop.xlane.xlu0 %920  ;;  %v2079_v6 = vpop.eup %1481 }
 0x363   :  { %1491 = vpow2.f32 %v1012_v41  ;;  %v1014_v34 = vmul.f32 1.442695, %v953_v29  ;;  %v954_v3 = vsub.f32 %v1971_v38, %v921_v5 }
 0x364   :  { %v923_v32 = vpop.xlane.xlu1 %922 }
 0x365   :  { %v2081_v45 = vpop.eup %1483  ;;  %1493 = vpow2.f32 %v1014_v34  ;;  %v1016_v8 = vmul.f32 1.442695, %v954_v3  ;;  %v955_v10 = vsub.f32 %v1975_v40, %v923_v32  ;;  %1062 = vadd.xlane.f32.xlu1 %v2079_v6 }
 0x366   :  { %1072 = vadd.xlane.f32.xlu0 %v2081_v45  ;;  %v2086_v11 = vpop.eup %1485 }
 0x367   :  { %1495 = vpow2.f32 %v1016_v8  ;;  %v1018_v37 = vmul.f32 1.442695, %v955_v10 }
 0x369   :  { %v2088_v48 = vpop.eup %1487  ;;  %1497 = vpow2.f32 %v1018_v37  ;;  %1074 = vadd.xlane.f32.xlu1 %v2086_v11 }
 0x36a   :  { %1068 = vadd.xlane.f32.xlu0 %v2088_v48  ;;  %v2092_v38 = vpop.eup %1489 }
 0x36d   :  { %v2094_v14 = vpop.eup %1491  ;;  %1070 = vadd.xlane.f32.xlu1 %v2092_v38 }
 0x36e   :  { %1076 = vadd.xlane.f32.xlu0 %v2094_v14 }
 0x36f   :  { %v2098_v40 = vpop.eup %1493 }
 0x371   :  { %v2100_v63 = vpop.eup %1495  ;;  %1078 = vadd.xlane.f32.xlu1 %v2098_v40 }
 0x372   :  { %1080 = vadd.xlane.f32.xlu0 %v2100_v63 }
 0x373   :  { %v2104_v17 = vpop.eup %1497 }
 0x375   :  { %1082 = vadd.xlane.f32.xlu1 %v2104_v17 }
 0x3c2   :  { %v1025_v13 = vpop.xlane.xlu0 %1024 }
 0x3c3   :  { %1499 = vrcp.f32 %v1025_v13 }
 0x3c6   :  { %v1027_v22 = vpop.xlane.xlu1 %1026  ;;  %v1021_v52 = vpop.xlane.xlu0 %1020 }
 0x3c7   :  { %1501 = vrcp.f32 %v1027_v22 }
 0x3c8   :  { %1503 = vrcp.f32 %v1021_v52 }
 0x3ca   :  { %v1023_v24 = vpop.xlane.xlu1 %1022 }
 0x3cb   :  { %1505 = vrcp.f32 %v1023_v24  ;;  %v1033_v25 = vpop.xlane.xlu0 %1032 }
 0x3cc   :  { %1507 = vrcp.f32 %v1033_v25 }
 0x3cd   :  { %v1500_v27 = vpop.eup %1499 }
 0x3ce   :  { %v1089_v18 = vmul.f32 %v1500_v27, %v1986_v9  ;;  %v1035_v33 = vpop.xlane.xlu1 %1034 }
 0x3cf   :  { %1509 = vrcp.f32 %v1035_v33  ;;  %v1029_v57 = vpop.xlane.xlu0 %1028 }
 0x3d0   :  { %1151 = vst.msk [vmem:[%s2274_s7 + $0x10] sm:$0xff] %vm1148_vm1, %v1089_v18  ;;  %1511 = vrcp.f32 %v1029_v57 }
 0x3d1   :  { %v1502_v35 = vpop.eup %1501 }
 0x3d2   :  { %v1504_v42 = vpop.eup %1503  ;;  %v1091_v43 = vmul.f32 %v1502_v35, %v1993_v19  ;;  %v1031_v21 = vpop.xlane.xlu1 %1030 }
 0x3d3   :  { %v1085_v60 = vmul.f32 %v1504_v42, %v1990_v16  ;;  %1513 = vrcp.f32 %v1031_v21  ;;  %v1041_v49 = vpop.xlane.xlu0 %1040 }
 0x3d4   :  { %1152 = vst.msk [vmem:[%s2274_s7 + $0x18] sm:$0xff] %vm1148_vm1, %v1091_v43  ;;  %1515 = vrcp.f32 %v1041_v49 }
 0x3d5   :  { %v1506_v9 = vpop.eup %1505  ;;  %1149 = vst.msk [vmem:[%s2274_s7] sm:$0xff] %vm1148_vm1, %v1085_v60 }
 0x3d6   :  { %v1508_v50 = vpop.eup %1507  ;;  %v1087_v19 = vmul.f32 %v1506_v9, %v1999_v30  ;;  %v1043_v51 = vpop.xlane.xlu1 %1042 }
 0x3d7   :  { %v1097_v16 = vmul.f32 %v1508_v50, %v2002_v31  ;;  %1517 = vrcp.f32 %v1043_v51  ;;  %v1037_v53 = vpop.xlane.xlu0 %1036 }
 0x3d8   :  { %1150 = vst.msk [vmem:[%s2274_s7 + $0x8] sm:$0xff] %vm1148_vm1, %v1087_v19  ;;  %1519 = vrcp.f32 %v1037_v53 }
 0x3d9   :  { %v1510_v26 = vpop.eup %1509  ;;  %1155 = vst.msk [vmem:[%s2274_s7 + $0x30] sm:$0xff] %vm1148_vm1, %v1097_v16 }
 0x3da   :  { %v1512_v2 = vpop.eup %1511  ;;  %v1099_v30 = vmul.f32 %v1510_v26, %v2007_v59  ;;  %v1039_v56 = vpop.xlane.xlu1 %1038 }
 0x3db   :  { %v1093_v31 = vmul.f32 %v1512_v2, %v2010_v47  ;;  %1521 = vrcp.f32 %v1039_v56  ;;  %v1049_v58 = vpop.xlane.xlu0 %1048 }
 0x3dc   :  { %1156 = vst.msk [vmem:[%s2274_s7 + $0x38] sm:$0xff] %vm1148_vm1, %v1099_v30  ;;  %1523 = vrcp.f32 %v1049_v58 }
 0x3dd   :  { %v1514_v28 = vpop.eup %1513  ;;  %1153 = vst.msk [vmem:[%s2274_s7 + $0x20] sm:$0xff] %vm1148_vm1, %v1093_v31 }
 0x3de   :  { %v1516_v41 = vpop.eup %1515  ;;  %v1095_v59 = vmul.f32 %v1514_v28, %v2015_v62  ;;  %v1051_v29 = vpop.xlane.xlu1 %1050 }
 0x3df   :  { %v1105_v47 = vmul.f32 %v1516_v41, %v2018_v39  ;;  %1525 = vrcp.f32 %v1051_v29  ;;  %v1045_v5 = vpop.xlane.xlu0 %1044 }
 0x3e0   :  { %1154 = vst.msk [vmem:[%s2274_s7 + $0x28] sm:$0xff] %vm1148_vm1, %v1095_v59  ;;  %1527 = vrcp.f32 %v1045_v5 }
 0x3e1   :  { %v1518_v34 = vpop.eup %1517  ;;  %1159 = vst.msk [vmem:[%s2274_s7 + $0x50] sm:$0xff] %vm1148_vm1, %v1105_v47 }
 0x3e2   :  { %v1520_v3 = vpop.eup %1519  ;;  %v1107_v62 = vmul.f32 %v1518_v34, %v2023_v4  ;;  %v1047_v32 = vpop.xlane.xlu1 %1046 }
 0x3e3   :  { %v1101_v39 = vmul.f32 %v1520_v3, %v2026_v1  ;;  %1529 = vrcp.f32 %v1047_v32  ;;  %v1057_v8 = vpop.xlane.xlu0 %1056 }
 0x3e4   :  { %1160 = vst.msk [vmem:[%s2274_s7 + $0x58] sm:$0xff] %vm1148_vm1, %v1107_v62  ;;  %1531 = vrcp.f32 %v1057_v8 }
 0x3e5   :  { %v1522_v10 = vpop.eup %1521  ;;  %1157 = vst.msk [vmem:[%s2274_s7 + $0x40] sm:$0xff] %vm1148_vm1, %v1101_v39 }
 0x3e6   :  { %v1524_v37 = vpop.eup %1523  ;;  %v1103_v4 = vmul.f32 %v1522_v10, %v2031_v7  ;;  %v1059_v13 = vpop.xlane.xlu1 %1058 }
 0x3e7   :  { %v1113_v1 = vmul.f32 %v1524_v37, %v2034_v46  ;;  %1533 = vrcp.f32 %v1059_v13  ;;  %v1053_v22 = vpop.xlane.xlu0 %1052 }
 0x3e8   :  { %1158 = vst.msk [vmem:[%s2274_s7 + $0x48] sm:$0xff] %vm1148_vm1, %v1103_v4  ;;  %1535 = vrcp.f32 %v1053_v22 }
 0x3e9   :  { %v1526_v52 = vpop.eup %1525  ;;  %1163 = vst.msk [vmem:[%s2274_s7 + $0x70] sm:$0xff] %vm1148_vm1, %v1113_v1 }
 0x3ea   :  { %v1528_v24 = vpop.eup %1527  ;;  %v1115_v7 = vmul.f32 %v1526_v52, %v2039_v12  ;;  %v1055_v25 = vpop.xlane.xlu1 %1054 }
 0x3eb   :  { %v1109_v46 = vmul.f32 %v1528_v24, %v2042_v36  ;;  %1537 = vrcp.f32 %v1055_v25  ;;  %v1065_v27 = vpop.xlane.xlu0 %1064 }
 0x3ec   :  { %1164 = vst.msk [vmem:[%s2274_s7 + $0x78] sm:$0xff] %vm1148_vm1, %v1115_v7  ;;  %1539 = vrcp.f32 %v1065_v27 }
 0x3ed   :  { %v1530_v18 = vpop.eup %1529  ;;  %1161 = vst.msk [vmem:[%s2274_s7 + $0x60] sm:$0xff] %vm1148_vm1, %v1109_v46 }
 0x3ee   :  { %v1532_v33 = vpop.eup %1531  ;;  %v1111_v12 = vmul.f32 %v1530_v18, %v2047_v15  ;;  %v1067_v57 = vpop.xlane.xlu1 %1066 }
 0x3ef   :  { %v1121_v36 = vmul.f32 %v1532_v33, %v2050_v54  ;;  %1541 = vrcp.f32 %v1067_v57  ;;  %v1061_v35 = vpop.xlane.xlu0 %1060 }
 0x3f0   :  { %1162 = vst.msk [vmem:[%s2274_s7 + $0x68] sm:$0xff] %vm1148_vm1, %v1111_v12  ;;  %1543 = vrcp.f32 %v1061_v35 }
 0x3f1   :  { %v1534_v42 = vpop.eup %1533  ;;  %1167 = vst.msk [vmem:[%s2274_s7 + $0x90] sm:$0xff] %vm1148_vm1, %v1121_v36 }
 0x3f2   :  { %v1536_v43 = vpop.eup %1535  ;;  %v1123_v15 = vmul.f32 %v1534_v42, %v2055_v20  ;;  %v1063_v21 = vpop.xlane.xlu1 %1062 }
 0x3f3   :  { %v1117_v54 = vmul.f32 %v1536_v43, %v2058_v44  ;;  %1545 = vrcp.f32 %v1063_v21  ;;  %v1073_v60 = vpop.xlane.xlu0 %1072 }
 0x3f4   :  { %1168 = vst.msk [vmem:[%s2274_s7 + $0x98] sm:$0xff] %vm1148_vm1, %v1123_v15  ;;  %1547 = vrcp.f32 %v1073_v60 }
 0x3f5   :  { %v1538_v49 = vpop.eup %1537  ;;  %1165 = vst.msk [vmem:[%s2274_s7 + $0x80] sm:$0xff] %vm1148_vm1, %v1117_v54 }
 0x3f6   :  { %v1540_v9 = vpop.eup %1539  ;;  %v1119_v20 = vmul.f32 %v1538_v49, %v2063_v23  ;;  %v1075_v50 = vpop.xlane.xlu1 %1074 }
 0x3f7   :  { %v1129_v44 = vmul.f32 %v1540_v9, %v2066_v55  ;;  %1549 = vrcp.f32 %v1075_v50  ;;  %v1069_v19 = vpop.xlane.xlu0 %1068 }
 0x3f8   :  { %1166 = vst.msk [vmem:[%s2274_s7 + $0x88] sm:$0xff] %vm1148_vm1, %v1119_v20  ;;  %1551 = vrcp.f32 %v1069_v19 }
 0x3f9   :  { %v1542_v51 = vpop.eup %1541  ;;  %1171 = vst.msk [vmem:[%s2274_s7 + $0xb0] sm:$0xff] %vm1148_vm1, %v1129_v44 }
 0x3fa   :  { %v1544_v16 = vpop.eup %1543  ;;  %v1131_v23 = vmul.f32 %v1542_v51, %v2071_v61  ;;  %v1071_v53 = vpop.xlane.xlu1 %1070 }
 0x3fb   :  { %v1125_v55 = vmul.f32 %v1544_v16, %v2073_v0  ;;  %1553 = vrcp.f32 %v1071_v53  ;;  %v1077_v26 = vpop.xlane.xlu0 %1076 }
 0x3fc   :  { %1172 = vst.msk [vmem:[%s2274_s7 + $0xb8] sm:$0xff] %vm1148_vm1, %v1131_v23  ;;  %1555 = vrcp.f32 %v1077_v26 }
 0x3fd   :  { %v1546_v2 = vpop.eup %1545  ;;  %1169 = vst.msk [vmem:[%s2274_s7 + $0xa0] sm:$0xff] %vm1148_vm1, %v1125_v55 }
 0x3fe   :  { %v1548_v30 = vpop.eup %1547  ;;  %v1127_v61 = vmul.f32 %v1546_v2, %v2079_v6  ;;  %v1079_v56 = vpop.xlane.xlu1 %1078 }
 0x3ff   :  { %v1137_v0 = vmul.f32 %v1548_v30, %v2081_v45  ;;  %1557 = vrcp.f32 %v1079_v56  ;;  %v1081_v31 = vpop.xlane.xlu0 %1080 }
 0x400   :  { %1170 = vst.msk [vmem:[%s2274_s7 + $0xa8] sm:$0xff] %vm1148_vm1, %v1127_v61  ;;  %1559 = vrcp.f32 %v1081_v31 }
 0x401   :  { %v1550_v58 = vpop.eup %1549  ;;  %1175 = vst.msk [vmem:[%s2274_s7 + $0xd0] sm:$0xff] %vm1148_vm1, %v1137_v0 }
 0x402   :  { %v1552_v28 = vpop.eup %1551  ;;  %v1139_v6 = vmul.f32 %v1550_v58, %v2086_v11  ;;  %v1083_v41 = vpop.xlane.xlu1 %1082 }
 0x403   :  { %v1133_v45 = vmul.f32 %v1552_v28, %v2088_v48  ;;  %1561 = vrcp.f32 %v1083_v41 }
 0x404   :  { %1176 = vst.msk [vmem:[%s2274_s7 + $0xd8] sm:$0xff] %vm1148_vm1, %v1139_v6 }
 0x405   :  { %v1554_v59 = vpop.eup %1553  ;;  %1173 = vst.msk [vmem:[%s2274_s7 + $0xc0] sm:$0xff] %vm1148_vm1, %v1133_v45 }
 0x406   :  { %v1556_v29 = vpop.eup %1555  ;;  %v1135_v47 = vmul.f32 %v1554_v59, %v2092_v38 }
 0x407   :  { %v1141_v11 = vmul.f32 %v1556_v29, %v2094_v14 }
 0x408   :  { %1174 = vst.msk [vmem:[%s2274_s7 + $0xc8] sm:$0xff] %vm1148_vm1, %v1135_v47 }
 0x409   :  { %v1558_v48 = vpop.eup %1557  ;;  %1177 = vst.msk [vmem:[%s2274_s7 + $0xe0] sm:$0xff] %vm1148_vm1, %v1141_v11 }
 0x40a   :  { %v1560_v5 = vpop.eup %1559  ;;  %v1143_v34 = vmul.f32 %v1558_v48, %v2098_v40 }
 0x40b   :  { %v1145_v3 = vmul.f32 %v1560_v5, %v2100_v63 }
 0x40c   :  { %1178 = vst.msk [vmem:[%s2274_s7 + $0xe8] sm:$0xff] %vm1148_vm1, %v1143_v34 }
 0x40d   :  { %v1562_v38 = vpop.eup %1561  ;;  %1179 = vst.msk [vmem:[%s2274_s7 + $0xf0] sm:$0xff] %vm1148_vm1, %v1145_v3 }
 0x40e   :  { %v1147_v14 = vmul.f32 %v1562_v38, %v2104_v17 }
 0x410   :  { %1180 = vst.msk [vmem:[%s2274_s7 + $0xf8] sm:$0xff] %vm1148_vm1, %v1147_v14 }

</bundles_post_ra>
